<compile_context>
chip_gen: v7x
topology: tpu7x:2x2x1
jax: 0.10.0
libtpu: 0.0.40
codegen_flags: <defaults>
</compile_context>

<pallas_src>
import functools

import jax
import jax.numpy as jnp
from jax.experimental import pallas as pl
from jax.experimental.pallas import tpu as pltpu


def _round_up(x, m):
    return ((x + m - 1) // m) * m


def _pad2(a, rows, cols):
    out = jnp.zeros((rows, cols), jnp.float32)
    return out.at[: a.shape[0], : a.shape[1]].set(a.astype(jnp.float32))


def _sage_layer_kernel(nnz_ref, kt_ref, adj_ref, xs_ref, xt_ref, inv_ref,
                       w_ref, b_ref, *rest, fuse_classifier):
    # Ref ordering: scalar-prefetch..., inputs..., outputs..., scratch.
    if fuse_classifier:
        wc_ref, bc_ref, h_ref, z_ref, acc_ref = rest
    else:
        h_ref, acc_ref = rest
        wc_ref = bc_ref = z_ref = None

    i = pl.program_id(0)
    k = pl.program_id(1)

    @pl.when(k == 0)
    def _init():
        acc_ref[...] = jnp.zeros_like(acc_ref)

    # Accumulate the (unnormalized) neighbor-feature sum for this row tile, but only
    # for real (nonzero) adjacency tiles; padded reduction steps repeat the previous
    # block index (no DMA) and are skipped here.
    @pl.when(k < nnz_ref[i])
    def _accumulate():
        acc_ref[...] += jnp.dot(adj_ref[...].astype(jnp.bfloat16), xs_ref[...],
                                preferred_element_type=jnp.float32)

    @pl.when(k == pl.num_programs(1) - 1)
    def _finalize():
        # Mean aggregation: normalize by in-degree in f32 (exact counts / exact deg).
        agg = acc_ref[...] * inv_ref[...]                     # (tm, fin_pad) f32
        # Fused SAGE update: [agg, x_self] @ [[W_l],[W_r]] + b  (single MXU pass).
        cat = jnp.concatenate([agg.astype(jnp.bfloat16), xt_ref[...]], axis=1)
        h = jnp.dot(cat, w_ref[...], preferred_element_type=jnp.float32) + b_ref[...]
        h = jnp.maximum(h, 0.0)
        h_ref[...] = h.astype(h_ref.dtype)
        if fuse_classifier:
            z_ref[...] = (jnp.dot(h.astype(jnp.bfloat16), wc_ref[...],
                                  preferred_element_type=jnp.float32) + bc_ref[...])


def _sage_layer(nnz, kt, max_nnz, adj, x, inv_deg, w, bias, *, tm, tk,
                out_dtype, classifier=None):
    n_pad = adj.shape[0]
    fin_pad = x.shape[1]
    fout_pad = w.shape[1]
    n_rt = n_pad // tm

    # Data-dependent reduction schedule: walk only the nonzero adjacency tiles.
    def adj_map(i, k, nnz_ref, kt_ref):
        return (i, kt_ref[i * max_nnz + k])

    def xs_map(i, k, nnz_ref, kt_ref):
        return (kt_ref[i * max_nnz + k], 0)

    in_specs = [
        pl.BlockSpec((tm, tk), adj_map),                              # adjacency tile (int8)
        pl.BlockSpec((tk, fin_pad), xs_map),                          # source-node features
        pl.BlockSpec((tm, fin_pad), lambda i, k, *_: (i, 0)),         # target (self) features
        pl.BlockSpec((tm, 1), lambda i, k, *_: (i, 0)),               # 1 / in-degree
        pl.BlockSpec((2 * fin_pad, fout_pad), lambda i, k, *_: (0, 0)),  # stacked [W_l; W_r]
        pl.BlockSpec((1, fout_pad), lambda i, k, *_: (0, 0)),            # bias
    ]
    inputs = [adj, x, x, inv_deg, w, bias]

    out_specs = pl.BlockSpec((tm, fout_pad), lambda i, k, *_: (i, 0))
    out_shape = jax.ShapeDtypeStruct((n_pad, fout_pad), out_dtype)

    if classifier is not None:
        wc, bc = classifier
        c_pad = wc.shape[1]
        in_specs += [
            pl.BlockSpec((fout_pad, c_pad), lambda i, k, *_: (0, 0)),
            pl.BlockSpec((1, c_pad), lambda i, k, *_: (0, 0)),
        ]
        inputs += [wc, bc]
        out_specs = (out_specs, pl.BlockSpec((tm, c_pad), lambda i, k, *_: (i, 0)))
        out_shape = (out_shape, jax.ShapeDtypeStruct((n_pad, c_pad), jnp.float32))

    kernel = functools.partial(_sage_layer_kernel,
                               fuse_classifier=classifier is not None)

    return pl.pallas_call(
        kernel,
        out_shape=out_shape,
        grid_spec=pltpu.PrefetchScalarGridSpec(
            num_scalar_prefetch=2,
            grid=(n_rt, max_nnz),
            in_specs=in_specs,
            out_specs=out_specs,
            scratch_shapes=[pltpu.VMEM((tm, fin_pad), jnp.float32)],
        ),
        compiler_params=pltpu.CompilerParams(
            dimension_semantics=("parallel", "arbitrary"),
            # Well above any tile configuration here, well below v7x's 64 MiB physical.
            vmem_limit_bytes=32 * 1024 * 1024,
        ),
    )(nnz, kt, *inputs)


def graphsage_forward(x, edge_index, params):
    """x: (N, F) float32 node features; edge_index: (2, E) int32 [src, dst]."""
    n, f = x.shape
    num_classes = params["wc"].shape[1]

    # Lane-dense padded sizes (everything a multiple of 128 on the lane axis).
    n_pad = _round_up(n, 128)
    f_pad = _round_up(f, 128)
    h1_pad = 128   # hidden 64 -> 128
    h2_pad = 128   # hidden 32 -> 128
    c_pad = _round_up(max(num_classes, 1), 128)

    src, dst = edge_index[0], edge_index[1]

    # Adjacency counts built directly in int8 (the dominant HBM stream).
    # NOTE: exact only for <= 127 parallel edges per (dst, src) pair.
    adj_i8 = jnp.zeros((n_pad, n_pad), jnp.int8).at[dst, src].add(jnp.int8(1))

    # In-degree straight from the edge list (no dense N^2 row reduction).
    deg = jnp.zeros((n_pad,), jnp.float32).at[dst].add(1.0)
    inv_deg = (1.0 / jnp.maximum(deg, 1.0)).reshape(n_pad, 1)

    x_p = jnp.zeros((n_pad, f_pad), jnp.bfloat16).at[:n, :f].set(
        x.astype(jnp.bfloat16))

    # Stacked, zero-padded weights: [agg, x_self] @ [[W_l],[W_r]] in one MXU pass.
    w1 = jnp.concatenate([_pad2(params["w1l"], f_pad, h1_pad),
                          _pad2(params["w1r"], f_pad, h1_pad)],
                         axis=0).astype(jnp.bfloat16)
    b1 = _pad2(params["b1"], 1, h1_pad)
    w2 = jnp.concatenate([_pad2(params["w2l"], h1_pad, h2_pad),
                          _pad2(params["w2r"], h1_pad, h2_pad)],
                         axis=0).astype(jnp.bfloat16)
    b2 = _pad2(params["b2"], 1, h2_pad)
    wc = _pad2(params["wc"], h2_pad, c_pad).astype(jnp.bfloat16)
    bc = _pad2(params["bc"], 1, c_pad)

    # Tile selection: as large as possible, but keep >= 2 row tiles so the
    # "parallel" axis still splits across v7x's two TensorCores.
    tm = 128
    for cand in (512, 256):
        if n_pad % cand == 0 and n_pad // cand >= 2:
            tm = cand
            break
    tk = 128
    for cand in (2048, 1024, 512, 256):
        if n_pad % cand == 0:
            tk = cand
            break
    n_rt, n_kt = n_pad // tm, n_pad // tk

    # Block-sparse reduction schedule: per row tile, the ascending list of nonzero
    # (tm, tk) adjacency tiles, right-padded by repeating the last valid index so
    # padded steps re-use the previous block (their DMA is elided).
    occ = (adj_i8.reshape(n_rt, tm, n_kt, tk) != 0).any(axis=(1, 3))   # (n_rt, n_kt)
    nnz = occ.astype(jnp.int32).sum(axis=1)                            # (n_rt,)
    max_nnz = max(int(nnz.max()), 1)                                   # concrete grid extent
    order = jnp.argsort((~occ).astype(jnp.int32), axis=1, stable=True).astype(jnp.int32)
    pos = jnp.minimum(jnp.arange(max_nnz, dtype=jnp.int32)[None, :],
                      jnp.maximum(nnz[:, None] - 1, 0))
    kt = jnp.take_along_axis(order, pos, axis=1).reshape(-1).astype(jnp.int32)

    # Layer 1: (n_pad, f_pad) -> (n_pad, 128) bf16 intermediate (halves HBM traffic
    # when it is re-read as the aggregation source of layer 2).
    h1 = _sage_layer(nnz, kt, max_nnz, adj_i8, x_p, inv_deg, w1, b1,
                     tm=tm, tk=tk, out_dtype=jnp.bfloat16)

    # Layer 2 + fused classifier epilogue: outputs f32, lane-dense (128-wide).
    h2_p, z_p = _sage_layer(nnz, kt, max_nnz, adj_i8, h1, inv_deg, w2, b2,
                            tm=tm, tk=tk, out_dtype=jnp.float32,
                            classifier=(wc, bc))

    return h2_p[:n, :32], z_p[:n, :num_classes]


def init_params(key, num_features, num_classes=4):
    ks = jax.random.split(key, 7)

    def lin(k, fan_in, fan_out):
        bound = 1.0 / jnp.sqrt(fan_in)
        return jax.random.uniform(k, (fan_in, fan_out), jnp.float32, -bound, bound)

    return {
        # SAGEConv1 (num_features -> 64): lin_l (with bias), lin_r (no bias)
        "w1l": lin(ks[0], num_features, 64),
        "w1r": lin(ks[1], num_features, 64),
        "b1": jnp.zeros((1, 64), jnp.float32),
        # SAGEConv2 (64 -> 32)
        "w2l": lin(ks[2], 64, 32),
        "w2r": lin(ks[3], 64, 32),
        "b2": jnp.zeros((1, 32), jnp.float32),
        # classifier Linear(32 -> num_classes)
        "wc": lin(ks[4], 32, num_classes),
        "bc": jax.random.uniform(ks[5], (1, num_classes), jnp.float32,
                                 -1.0 / jnp.sqrt(32.0), 1.0 / jnp.sqrt(32.0)),
    }


def _reference(x, edge_index, params):
    n = x.shape[0]
    src, dst = edge_index[0], edge_index[1]
    adj = jnp.zeros((n, n), jnp.float32).at[dst, src].add(1.0)
    a = adj / jnp.maximum(adj.sum(axis=1, keepdims=True), 1.0)
    h1 = jnp.maximum(a @ x @ params["w1l"] + x @ params["w1r"] + params["b1"], 0.0)
    h2 = jnp.maximum(a @ h1 @ params["w2l"] + h1 @ params["w2r"] + params["b2"], 0.0)
    z = h2 @ params["wc"] + params["bc"]
    return h2, z


if __name__ == "__main__":
    key = jax.random.PRNGKey(0)
    kx, ke1, ke2s, ke2d, ke3s, ke3d, kp = jax.random.split(key, 7)

    num_nodes = 300
    num_features = 16
    num_classes = 4

    x = jax.random.normal(kx, (num_nodes, num_features), jnp.float32)

    # Block-structured sparse edge set (exercises the block-sparse schedule with
    # 128x128 tiles): occupied adjacency tiles are (0,0), (0,1), (1,2); row tile 2
    # (dst >= 256) has no in-edges at all (self-term-only finalize path).
    e1 = jax.random.randint(ke1, (2, 400), 0, 100, jnp.int32)                 # tile (0,0)
    e2 = jnp.stack([jax.random.randint(ke2s, (80,), 128, 228, jnp.int32),     # src
                    jax.random.randint(ke2d, (80,), 0, 100, jnp.int32)])      # dst -> tile (0,1)
    e3 = jnp.stack([jax.random.randint(ke3s, (60,), 256, 300, jnp.int32),     # src
                    jax.random.randint(ke3d, (60,), 128, 200, jnp.int32)])    # dst -> tile (1,2)
    edge_index = jnp.concatenate([e1, e2, e3], axis=1)

    params = init_params(kp, num_features, num_classes)

    h2, z = graphsage_forward(x, edge_index, params)
    jax.block_until_ready((h2, z))

    assert h2.shape == (num_nodes, 32) and z.shape == (num_nodes, num_classes)

    # Correctness check vs f32 dense reference (int8 counts / bf16 feature path).
    h2_ref, z_ref = _reference(x, edge_index, params)
    err_h2 = float(jnp.max(jnp.abs(h2 - h2_ref)))
    err_z = float(jnp.max(jnp.abs(z - z_ref)))
    assert err_h2 < 0.1, err_h2
    assert err_z < 0.1, err_z

    print("KERNEL_OK")
</pallas_src>

<mosaic_0001>
module attributes {stable_mosaic.version = 11 : i64} {
  func.func @_sage_layer_kernel(%arg0: i32, %arg1: i32, %arg2: memref<3xi32, #tpu.memory_space<smem>>, %arg3: memref<6xi32, #tpu.memory_space<smem>>, %arg4: memref<128x128xi8, #tpu.memory_space<vmem>>, %arg5: memref<128x128xbf16, #tpu.memory_space<vmem>>, %arg6: memref<128x128xbf16, #tpu.memory_space<vmem>>, %arg7: memref<128x1xf32, #tpu.memory_space<vmem>>, %arg8: memref<256x128xbf16, #tpu.memory_space<vmem>>, %arg9: memref<1x128xf32, #tpu.memory_space<vmem>>, %arg10: memref<128x128xbf16, #tpu.memory_space<vmem>>, %arg11: memref<128x128xf32, #tpu.memory_space<vmem>>) attributes {dimension_semantics = [#tpu.dimension_semantics<parallel>, #tpu.dimension_semantics<arbitrary>], iteration_bounds = array<i64: 3, 2>, scalar_prefetch = 2 : i64, scratch_operands = 1 : i64, tpu.core_type = #tpu.core_type<tc>, window_params = [{transform_indices = @transform_0, window_bounds = array<i64: 128, 128>}, {transform_indices = @transform_1, window_bounds = array<i64: 128, 128>}, {transform_indices = @transform_2, window_bounds = array<i64: 128, 128>}, {transform_indices = @transform_3, window_bounds = array<i64: 128, 1>}, {pipeline_mode = #tpu.pipeline_mode<synchronous>, transform_indices = @transform_4, window_bounds = array<i64: 256, 128>}, {pipeline_mode = #tpu.pipeline_mode<synchronous>, transform_indices = @transform_5, window_bounds = array<i64: 1, 128>}, {transform_indices = @transform_6, window_bounds = array<i64: 128, 128>}]} {
    %c0_i32 = arith.constant 0 : i32
    %0 = arith.cmpi eq, %arg1, %c0_i32 : i32
    %1 = arith.extui %0 : i1 to i32
    %c0_i32_0 = arith.constant 0 : i32
    %2 = arith.cmpi ne, %1, %c0_i32_0 : i32
    scf.if %2 {
      %cst = arith.constant 0.000000e+00 : f32
      %11 = vector.broadcast %cst : f32 to vector<128x128xf32>
      %c0 = arith.constant 0 : index
      %c0_3 = arith.constant 0 : index
      %12 = vector.load %arg11[%c0, %c0_3] : memref<128x128xf32, #tpu.memory_space<vmem>>, vector<128x128xf32>
      tpu.vector_store %arg11[%c0, %c0_3], %11 {strides = array<i32>} : memref<128x128xf32, #tpu.memory_space<vmem>>, vector<128x128xf32>,
    } else {
    }
    %3 = arith.index_cast %arg0 : i32 to index
    %4 = memref.load %arg2[%3] : memref<3xi32, #tpu.memory_space<smem>>
    %5 = arith.cmpi slt, %arg1, %4 : i32
    %6 = arith.extui %5 : i1 to i32
    %c0_i32_1 = arith.constant 0 : i32
    %7 = arith.cmpi ne, %6, %c0_i32_1 : i32
    scf.if %7 {
      %c0 = arith.constant 0 : index
      %c0_3 = arith.constant 0 : index
      %11 = vector.load %arg11[%c0, %c0_3] : memref<128x128xf32, #tpu.memory_space<vmem>>, vector<128x128xf32>
      %c0_4 = arith.constant 0 : index
      %c0_5 = arith.constant 0 : index
      %12 = vector.load %arg4[%c0_4, %c0_5] : memref<128x128xi8, #tpu.memory_space<vmem>>, vector<128x128xi8>
      %13 = arith.sitofp %12 : vector<128x128xi8> to vector<128x128xbf16>
      %c0_6 = arith.constant 0 : index
      %c0_7 = arith.constant 0 : index
      %14 = vector.load %arg5[%c0_6, %c0_7] : memref<128x128xbf16, #tpu.memory_space<vmem>>, vector<128x128xbf16>
      %cst = arith.constant dense<0.000000e+00> : vector<128x128xf32>
      %15 = tpu.matmul %13, %14, %cst {dimension_numbers = #tpu.dot_dimension_numbers<[1], [0], [0], [1], [0, 0, 1, 1], [], []>} : vector<128x128xbf16>, vector<128x128xbf16>, vector<128x128xf32> -> vector<128x128xf32>
      %16 = arith.addf %11, %15 : vector<128x128xf32>
      %c0_8 = arith.constant 0 : index
      %c0_9 = arith.constant 0 : index
      %17 = vector.load %arg11[%c0_8, %c0_9] : memref<128x128xf32, #tpu.memory_space<vmem>>, vector<128x128xf32>
      tpu.vector_store %arg11[%c0_8, %c0_9], %16 {strides = array<i32>} : memref<128x128xf32, #tpu.memory_space<vmem>>, vector<128x128xf32>,
    } else {
    }
    %c1_i32 = arith.constant 1 : i32
    %8 = arith.cmpi eq, %arg1, %c1_i32 : i32
    %9 = arith.extui %8 : i1 to i32
    %c0_i32_2 = arith.constant 0 : i32
    %10 = arith.cmpi ne, %9, %c0_i32_2 : i32
    scf.if %10 {
      %c0 = arith.constant 0 : index
      %c0_3 = arith.constant 0 : index
      %11 = vector.load %arg11[%c0, %c0_3] : memref<128x128xf32, #tpu.memory_space<vmem>>, vector<128x128xf32>
      %c0_4 = arith.constant 0 : index
      %c0_5 = arith.constant 0 : index
      %12 = vector.load %arg7[%c0_4, %c0_5] : memref<128x1xf32, #tpu.memory_space<vmem>>, vector<128x1xf32>
      %13 = vector.broadcast %12 : vector<128x1xf32> to vector<128x128xf32>
      %14 = arith.mulf %11, %13 : vector<128x128xf32>
      %15 = arith.truncf %14 : vector<128x128xf32> to vector<128x128xbf16>
      %c0_6 = arith.constant 0 : index
      %c0_7 = arith.constant 0 : index
      %16 = vector.load %arg6[%c0_6, %c0_7] : memref<128x128xbf16, #tpu.memory_space<vmem>>, vector<128x128xbf16>
      %17 = tpu.concatenate %15, %16 in 1 : vector<128x128xbf16>, vector<128x128xbf16> -> vector<128x256xbf16>
      %c0_8 = arith.constant 0 : index
      %c0_9 = arith.constant 0 : index
      %18 = vector.load %arg8[%c0_8, %c0_9] : memref<256x128xbf16, #tpu.memory_space<vmem>>, vector<256x128xbf16>
      %cst = arith.constant dense<0.000000e+00> : vector<128x128xf32>
      %19 = tpu.matmul %17, %18, %cst {dimension_numbers = #tpu.dot_dimension_numbers<[1], [0], [0], [1], [0, 0, 1, 1], [], []>} : vector<128x256xbf16>, vector<256x128xbf16>, vector<128x128xf32> -> vector<128x128xf32>
      %c0_10 = arith.constant 0 : index
      %c0_11 = arith.constant 0 : index
      %20 = vector.load %arg9[%c0_10, %c0_11] : memref<1x128xf32, #tpu.memory_space<vmem>>, vector<1x128xf32>
      %21 = vector.broadcast %20 : vector<1x128xf32> to vector<128x128xf32>
      %22 = arith.addf %19, %21 : vector<128x128xf32>
      %cst_12 = arith.constant 0.000000e+00 : f32
      %23 = vector.broadcast %cst_12 : f32 to vector<128x128xf32>
      %24 = arith.maximumf %22, %23 : vector<128x128xf32>
      %25 = arith.truncf %24 : vector<128x128xf32> to vector<128x128xbf16>
      %c0_13 = arith.constant 0 : index
      %c0_14 = arith.constant 0 : index
      %26 = vector.load %arg10[%c0_13, %c0_14] : memref<128x128xbf16, #tpu.memory_space<vmem>>, vector<128x128xbf16>
      tpu.vector_store %arg10[%c0_13, %c0_14], %25 {strides = array<i32>} : memref<128x128xbf16, #tpu.memory_space<vmem>>, vector<128x128xbf16>,
    } else {
    }
    return
  }
  func.func @transform_0(%arg0: i32, %arg1: i32, %arg2: memref<3xi32, #tpu.memory_space<smem>>, %arg3: memref<6xi32, #tpu.memory_space<smem>>) -> (i32, i32) {
    %c2_i32 = arith.constant 2 : i32
    %0 = arith.muli %arg0, %c2_i32 : i32
    %1 = arith.addi %0, %arg1 : i32
    %2 = arith.index_cast %1 : i32 to index
    %3 = memref.load %arg3[%2] : memref<6xi32, #tpu.memory_space<smem>>
    %c0_i32 = arith.constant 0 : i32
    return %arg0, %3 : i32, i32
  }
  func.func @transform_1(%arg0: i32, %arg1: i32, %arg2: memref<3xi32, #tpu.memory_space<smem>>, %arg3: memref<6xi32, #tpu.memory_space<smem>>) -> (i32, i32) {
    %c2_i32 = arith.constant 2 : i32
    %0 = arith.muli %arg0, %c2_i32 : i32
    %1 = arith.addi %0, %arg1 : i32
    %2 = arith.index_cast %1 : i32 to index
    %3 = memref.load %arg3[%2] : memref<6xi32, #tpu.memory_space<smem>>
    %c0_i32 = arith.constant 0 : i32
    %c0_i32_0 = arith.constant 0 : i32
    return %3, %c0_i32 : i32, i32
  }
  func.func @transform_2(%arg0: i32, %arg1: i32, %arg2: memref<3xi32, #tpu.memory_space<smem>>, %arg3: memref<6xi32, #tpu.memory_space<smem>>) -> (i32, i32) {
    %c0_i32 = arith.constant 0 : i32
    %c0_i32_0 = arith.constant 0 : i32
    return %arg0, %c0_i32 : i32, i32
  }
  func.func @transform_3(%arg0: i32, %arg1: i32, %arg2: memref<3xi32, #tpu.memory_space<smem>>, %arg3: memref<6xi32, #tpu.memory_space<smem>>) -> (i32, i32) {
    %c0_i32 = arith.constant 0 : i32
    %c0_i32_0 = arith.constant 0 : i32
    return %arg0, %c0_i32 : i32, i32
  }
  func.func @transform_4(%arg0: i32, %arg1: i32, %arg2: memref<3xi32, #tpu.memory_space<smem>>, %arg3: memref<6xi32, #tpu.memory_space<smem>>) -> (i32, i32) {
    %c0_i32 = arith.constant 0 : i32
    %c0_i32_0 = arith.constant 0 : i32
    %c0_i32_1 = arith.constant 0 : i32
    return %c0_i32, %c0_i32_0 : i32, i32
  }
  func.func @transform_5(%arg0: i32, %arg1: i32, %arg2: memref<3xi32, #tpu.memory_space<smem>>, %arg3: memref<6xi32, #tpu.memory_space<smem>>) -> (i32, i32) {
    %c0_i32 = arith.constant 0 : i32
    %c0_i32_0 = arith.constant 0 : i32
    %c0_i32_1 = arith.constant 0 : i32
    return %c0_i32, %c0_i32_0 : i32, i32
  }
  func.func @transform_6(%arg0: i32, %arg1: i32, %arg2: memref<3xi32, #tpu.memory_space<smem>>, %arg3: memref<6xi32, #tpu.memory_space<smem>>) -> (i32, i32) {
    %c0_i32 = arith.constant 0 : i32
    %c0_i32_0 = arith.constant 0 : i32
    return %arg0, %c0_i32 : i32, i32
  }
}

</mosaic_0001>

<bundles_post_ra>
// kernel: tpu_custom_call.1
= control target key start
LH: loop header
LB: loop body
LE: loop exit
PB: predicated region body
PF: predicated region fallthrough
CT: control target
= control target key end

     0   :  { %s2672_s0 = inlined_call_operand.vmem [shape: s32[3], index: 0, kind: input, shape index: {}]   ;;  %s2673_s2 = inlined_call_operand.vmem [shape: s8[384,384], index: 2, kind: input, shape index: {}]   ;;  %s2674_s3 = inlined_call_operand.hbm [shape: bf16[384,128], index: 3, kind: input, shape index: {}]   ;;  %s2675_s4 = inlined_call_operand.hbm [shape: bf16[384,128], index: 4, kind: input, shape index: {}]   ;;  %s2676_s5 = inlined_call_operand.vmem [shape: f32[384,1], index: 5, kind: input, shape index: {}]   ;;  %s2677_s6 = inlined_call_operand.hbm [shape: bf16[256,128], index: 6, kind: input, shape index: {}]   ;;  %s2678_s7 = inlined_call_operand.vmem [shape: f32[1,128], index: 7, kind: input, shape index: {}]   ;;  %s2679_s8 = inlined_call_operand.hbm [shape: bf16[384,128], index: 8, kind: output, shape index: {}]   ;;  %s2680_s1 = inlined_call_operand.vmem [shape: s32[6], index: 1, kind: input, shape index: {}]  }
   0x1   :  { %2699 = sst [smem:[#allocation33_spill]] %s2673_s2  ;;  %s13_s29 = sshll.u32 %s2672_s0, 4  ;;  %s14_s29 = int_to_ptr.vmem [resolvable:$true] %s13_s29 }
   0x2   :  { %2700 = sst [smem:[#allocation34_spill]] %s2676_s5  ;;  %s17_s10 = sshll.u32 %s2680_s1, 4  ;;  %s18_s10 = int_to_ptr.vmem [resolvable:$true] %s17_s10 }
   0x3   :  { %2701 = sst [smem:[#allocation35_spill]] %s2677_s6  ;;  %s1879_s11 = scalar_lea.vmem %s14_s29, 16 }
   0x4   :  { %2702 = sst [smem:[#allocation36_spill]] %s2678_s7  ;;  %p1880_p0 = scmp.ne.s32.totalorder %s14_s29, %s1879_s11 }
   0x5   :  { %2703 = sst [smem:[#allocation37_spill]] %s2679_s8  ;;  %p1884_p1 = scmp.lt.s32.totalorder %s14_s29, %s14_s29 }
   0x6   :  { %p1885_p2 = scmp.lt.s32.totalorder %s1879_s11, %s1879_s11 }
   0x8   :  { %p1886_p3 = por %p1885_p2, %p1884_p1 }
   0xa   :  { %p1887_p4 = pnand %p1886_p3, %p1880_p0 }
   0xc   :  { %1890 = shalt.err (!%p1887_p4)  }
   0xd   :  { %s2137_s12 = smov [#allocation4]   ;;  %s1891_s13 = scalar_lea.vmem %s18_s10, 16 }
   0xe   :  { %16 = dma.vmem_to_smem %s14_s29, 16, %s2137_s12, [#allocation3] }
   0xf   :  { %p1892_p5 = scmp.ne.s32.totalorder %s18_s10, %s1891_s13  ;;  %p1896_p6 = scmp.lt.s32.totalorder %s18_s10, %s18_s10 }
  0x10   :  { %p1897_p7 = scmp.lt.s32.totalorder %s1891_s13, %s1891_s13 }
  0x12   :  { %p1898_p8 = por %p1897_p7, %p1896_p6 }
  0x14   :  { %p1899_p9 = pnand %p1898_p8, %p1892_p5 }
  0x16   :  { %1902 = shalt.err (!%p1899_p9)  }
  0x17   :  { %s2138_s0 = smov [#allocation5]  }
  0x18   :  { %20 = dma.vmem_to_smem %s18_s10, 16, %s2138_s0, [#allocation3] }
  0x19   :  { %2067 = dma.done.wait [#allocation3], 32 }
  0x1a   :  { %2068 = vsyncadd [#allocation3], 4294967264 }
  0x1b   :  { %22 = sfence }
  0x1c   :  { %23 = vsyncpa [#allocation8], 0 }
  0x1d   :  { %25 = vsyncpa [#allocation8 + $0x1], 0 }
  0x1e   :  { %26 = vsyncpa [#allocation11], 0 }
  0x1f   :  { %28 = vsyncpa [#allocation11 + $0x1], 0 }
  0x20   :  { %29 = vsyncpa [#allocation9], 0 }
  0x21   :  { %31 = vsyncpa [#allocation9 + $0x1], 0  ;;  %s2202_s1 = smov 0   ;;  %s2204_s14 = smov 0  }
  0x22   :  { %s2206_s15 = smov 0   ;;  %s2208_s16 = smov 0  }
  0x23   :  { %s2210_s17 = smov 0   ;;  %s2212_s18 = smov 0  }
  0x24   :  { %s2214_s19 = smov 0   ;;  %s2216_s20 = smov 0  }
  0x25   :  { %s2218_s21 = smov 0   ;;  %s2220_s22 = smov 0  }
  0x26   :  { %s2222_s23 = smov 0   ;;  %s2224_s24 = smov 0  }
  0x27   :  { %s2226_s25 = smov 0  }
  0x28 LB: > { %2704 = sst [smem:[#allocation20_spill]] %s2087_s1  ;;  %s2268_s26 = sadd.s32 4294967295, %s2135_s25   ;;  %s2135_s25 = sphi %s2226_s25, %s37_s25   ;;  %s2131_s24 = sphi %s2224_s24, %s2772_s24   ;;  %s2127_s23 = sphi %s2222_s23, %s2761_s23   ;;  %s2123_s22 = sphi %s2220_s22, %s2771_s22   ;;  %s2119_s21 = sphi %s2218_s21, %s2760_s21   ;;  %s2115_s20 = sphi %s2216_s20, %s2770_s20   ;;  %s2111_s19 = sphi %s2214_s19, %s2769_s19   ;;  %s2107_s18 = sphi %s2212_s18, %s2768_s18   ;;  %s2103_s17 = sphi %s2210_s17, %s2767_s17   ;;  %s2099_s16 = sphi %s2208_s16, %s2757_s16   ;;  %s2095_s15 = sphi %s2206_s15, %s2766_s15   ;;  %s2091_s14 = sphi %s2204_s14, %s2765_s14   ;;  %s2087_s1 = sphi %s2202_s1, %s2764_s1  }
  0x29   : > { %2705 = sst [smem:[#allocation21_spill]] %s2103_s17  ;;  %s46_s28 = sadd.s32 1, %s2127_s23 }
  0x2a   : > { %2706 = sst [smem:[#allocation22_spill]] %s2119_s21  ;;  %s49_s29 = sadd.s32 1, %s2131_s24 }
  0x2b   : > { %2707 = sst [smem:[#allocation23_spill]] %s2123_s22  ;;  %p47_p10 = scmp.ge.s32.totalorder %s46_s28, 2 }
  0x2c   : > { %2708 = sst [smem:[#allocation24_spill]] %s2127_s23  ;;  %s1412_s30 = sshll.u32 %s2131_s24, 1 }
  0x2d   : > { %s2275_s9 = sadd.s32 %s2127_s23, %s1412_s30  ;;  %s2774_s28 = smov (%p47_p10, %s46_s28), 0 }
  0x2e   : > { %2709 = sst [smem:[#allocation25_spill]] %s2774_s28  ;;  %s2776_s29 = smov (!%p47_p10, %s49_s29), %s2131_s24 }
  0x2f   : > { %s55_s11 = sld [smem:[#allocation5 + %s2275_s9]]  ;;  %p71_p11 = scmp.ne.s32.totalorder %s2115_s20, %s2111_s19 }
  0x30   : > { %p51_p12 = scmp.ge.s32.totalorder %s2776_s29, 3  ;;  %p72_p13 = scmp.eq.s32.totalorder %s2135_s25, 0 }
  0x31   : > { %s89_s12 = sld [smem:[#allocation5 + %s2275_s9]]  ;;  %s96_s13 = sadd.s32 1, %s2107_s18 }
  0x32   : > { %s2778_s29 = smov (%p51_p12, %s2776_s29), 0  ;;  %p2291_p0 = por %p72_p13, %p71_p11 }
  0x33   : > { %2710 = sst [smem:[#allocation26_spill]] %s2778_s29  ;;  %p103_p1 = scmp.ne.s32.totalorder %s2107_s18, %s2103_s17 }
  0x34   : > { %s2711_s0 = scalar_select %p2291_p0, 1, 0 }
  0x35   : > { %s1413_s30 = sshll.u32 %s2778_s29, 1  ;;  %s59_s27 = ssub.s32 %s2131_s24, %s2778_s29 }
  0x36   : > { %s57_s10 = sadd.s32 %s1413_s30, %s2774_s28  ;;  %p2303_p2 = por %p103_p1, %p72_p13 }
  0x37   : > { %s58_s8 = sld [smem:[#allocation5 + %s57_s10]]  ;;  %p109_p3 = scmp.ne.s32.totalorder %s2103_s17, %s2099_s16 }
  0x38   : > { %s2712_s23 = scalar_select %p2303_p2, 1, 0 }
  0x39   : > { %s92_s7 = sld [smem:[#allocation5 + %s57_s10]]  ;;  %p2689_p4 = scmp.eq.s32.totalorder %s2268_s26, 0 }
  0x3a   : > { %p120_p5 = scmp.eq.s32.totalorder %s59_s27, 0  ;;  %s122_s29 = sadd.s32 1, %s2095_s15 }
  0x3b   : > { %p2313_p6 = por %p2689_p4, %p109_p3  ;;  %p129_p7 = scmp.ne.s32.totalorder %s2095_s15, %s2091_s14 }
  0x3c   : > { %s2320_s10 = scalar_select %p120_p5, %s2095_s15, %s122_s29  }
  0x3d   : > { %s2713_s30 = scalar_select %p2313_p6, 1, 0 }
  0x3e   : > { %2715 = sst [smem:[#allocation28_spill]] %s2320_s10  ;;  %p2327_p8 = por %p129_p7, %p72_p13 }
  0x3f   : > { %2714 = sst [smem:[#allocation27_spill]] %s2713_s30  ;;  %p135_p9 = scmp.ne.s32.totalorder %s2091_s14, %s2087_s1 }
  0x40   : > { %s2716_s16 = scalar_select %p2327_p8, 1, 0 }
  0x41   : > { %s60_s28 = ssub.s32 %s55_s11, %s58_s8  ;;  %s93_s21 = ssub.s32 %s89_s12, %s92_s7 }
  0x42   : > { %s61_s5 = sor.u32 %s60_s28, %s59_s27  ;;  %p94_p10 = scmp.eq.s32.totalorder %s93_s21, 0 }
  0x43   : > { %p62_p11 = scmp.eq.s32.totalorder %s61_s5, 0  ;;  %p2338_p12 = por %p135_p9, %p2689_p4 }
  0x44   : > { %s2343_s10 = scalar_select %p94_p10, %s2107_s18, %s96_s13  }
  0x45   : > { %s2717_s29 = scalar_select %p2338_p12, 1, 0 }
  0x46   : > { %2718 = sst [smem:[#allocation29_spill]] %s2343_s10  ;;  %s2719_s22 = sadd.s32 1, %s2115_s20 }
  0x47   : > { %s2348_s30 = scalar_select %p62_p11, %s2115_s20, %s2719_s22  }
  0x48   : > { %p227_p13 = scmp.eq.s32.totalorder %s2268_s26, 5  ;;  %s2721_s17 = sadd.s32 4294967294, %s2135_s25  }
  0x49   : > { %2720 = sst [smem:[#allocation30_spill]] %s2348_s30  ;;  %p233_p1 = scmp.eq.s32.totalorder %s2721_s17, 5 }
  0x4a   : > { %p1416_p3 = scmp.ge.s32.totalorder %s2135_s25, 1  ;;  %p240_p5 = scmp.lt.s32.totalorder %s2135_s25, 7 }
  0x4b   : > { %p2358_p6 = por %p227_p13, %p129_p7  ;;  %p2365_p4 = por %p233_p1, %p135_p9 }
  0x4c   : > { %p2369_p10 = pnand %p1416_p3, %p240_p5  ;;  %s2139_s17 = smov [#allocation12]  }
  0x4d   : > { %s2722_s7 = scalar_select %p2358_p6, 1, 0 }
  0x4e   : > { %s2724_s5 = scalar_select %p2365_p4, 1, 0 }
  0x4f   : > { %2723 = sst [smem:[#allocation31_spill]] %s2722_s7  ;;  %p1719_p11 = pneg %p2369_p10 }
  0x50   : > { %2725 = sst [smem:[#allocation32_spill]] %s2724_s5  ;;  %s252_s21 = sshll.u32 %s2139_s17, 4  ;;  %s253_s21 = int_to_ptr.vmem [resolvable:$true] %s252_s21 }
  0x51   : > { %s2726_s8 = scalar_select %p2369_p10, 1, 0 }
  0x52   : > { %p2727_p12 = scmp.eq.s32.totalorder %s2268_s26, 0  ;;  %s2729_s6 = sld [smem:[#allocation35_spill]] }
  0x54   : > { %p2377_p7 = pnand %p1719_p11, %p2727_p12 }
  0x56   : > { %p1905_p13 = pneg %p2377_p7 }
  0x58   : > { %s1903_s11 = scalar_lea.hbm %s2729_s6, 2048 }
  0x59   : > { %p1904_p9 = scmp.ne.s32.totalorder %s2729_s6, %s1903_s11  ;;  %p1910_p12 = scmp.lt.u32.totalorder %s1903_s11, %s2729_s6 }
  0x5b   : > { %p1906_p1 = pnand %p1905_p13, %p1904_p9 }
  0x5d   : > { %p1907_p3 = pneg %p1906_p1 }
  0x5f   : > { %p1912_p5 = pnand %p1910_p12, %p1907_p3 }
  0x61   : > { %1915 = shalt.err (!%p1912_p5)
}
  0x62   : > { %s1916_s10 = scalar_lea.vmem %s253_s21, 2048  ;;  %p1924_p10 = scmp.lt.s32.totalorder %s253_s21, %s253_s21 }
  0x63   : > { %p1917_p11 = scmp.ne.s32.totalorder %s253_s21, %s1916_s10  ;;  %p1925_p8 = scmp.lt.s32.totalorder %s1916_s10, %s1916_s10 }
  0x65   : > { %p1919_p4 = pnand %p1917_p11, %p1905_p13  ;;  %p1926_p2 = por %p1925_p8, %p1924_p10 }
  0x67   : > { %p1920_p6 = pneg %p1919_p4 }
  0x69   : > { %p1927_p0 = pnand %p1926_p2, %p1920_p6 }
  0x6b   : > { %1930 = shalt.err (!%p1927_p0)
}
  0x6c   : > { %s2140_s27 = smov 64   ;;  %s2141_s28 = smov 4  }
  0x6d   : > { %1722 = dma.hbm_to_vmem [thread:$0]  (!%p2377_p7), %s2729_s6, 2048, %s253_s21, [#allocation11], %s2140_s27, %s2140_s27, %s2141_s28  }
  0x6e   : > { %p1418_p9 = scmp.ge.s32.totalorder %s2135_s25, 6 }
  0x6f   : > { %p2730_p1 = scmp.ne.s32.totalorder (!%p1418_p9), %s2711_s0, 0 }
  0x70   : > { %265 = sbr.rel (%p1418_p9) target bundleno = 188 (0xbc), region = 24 }
  0x77   : > { %268 = sbr.rel (!%p2730_p1) target bundleno = 131 (0x83), region = 28  ;;  %s275_s30 = sld [smem:[#allocation5 + %s2275_s9]] (%p2730_p1) }
  0x78   : > { %s270_s10 = sand.u32 (%p2730_p1), 1, %s2115_s20   ;;  %s1706_s11 = smul.u32 (%p2730_p1), 12, %s2131_s24 }
  0x79   : > { %s1419_s17 = sshll.u32 (%p2730_p1), %s270_s10, 5  ;;  %s2731_s2 = sld [smem:[#allocation33_spill]] (%p2730_p1) }
  0x7a   : > { %s272_s21 = scalar_lea.vmem (%p2730_p1), [#allocation6], %s1419_s17 }
  0x7d   : > { %s278_s5 = sadd.s32 (%p2730_p1), %s1706_s11, %s275_s30 }
  0x7e   : > { %s1423_s1 = sshll.u32 %s278_s5, 3 }
  0x7f   : > { %s280_s12 = scalar_lea.vmem %s2731_s2, %s1423_s1 }
  0x80   : > { %v314_v0 = vld [vmem:[%s280_s12] sm:$0xff]  ;;  %v316_v1 = vld [vmem:[%s280_s12 + $0x18] sm:$0xff]  ;;  %v318_v2 = vld [vmem:[%s280_s12 + $0x30] sm:$0xff] }
  0x81   : > { %315 = vst [vmem:[%s272_s21] sm:$0xff] %v314_v0  ;;  %317 = vst [vmem:[%s272_s21 + $0x8] sm:$0xff] %v316_v1  ;;  %v320_v3 = vld [vmem:[%s280_s12 + $0x48] sm:$0xff] }
  0x82   : > { %319 = vst [vmem:[%s272_s21 + $0x10] sm:$0xff] %v318_v2  ;;  %321 = vst [vmem:[%s272_s21 + $0x18] sm:$0xff] %v320_v3 }
  0x83 PF: > { %s328_s0 = sand.u32 1, %s2107_s18   ;;  %p2732_p0 = scmp.ne.s32.totalorder %s2712_s23, 0 }
  0x84   : > { %s1424_s7 = sshll.u32 %s328_s0, 6  ;;  %s352_s13 = sand.u32 1, %s2135_s25  }
  0x85   : > { %s1709_s1 = scalar_select %p2732_p0, [#allocation5], [#allocation14] }
  0x86   : > { %s2780_s9 = smov (!%p2732_p0, %s2275_s9), 0  ;;  %s332_s27 = scalar_lea.vmem [#allocation7], %s1424_s7 }
  0x87   : > { %s335_s5 = sld [smem:[%s1709_s1 + %s2780_s9]]  ;;  %s342_s28 = sshll.u32 %s332_s27, 4  ;;  %s2415_s28 = int_to_ptr.vmem [resolvable:$true] %s342_s28 }
  0x88   : > { %s354_s30 = sand.u32 1, %s2095_s15   ;;  %s1497_s11 = sshll.u32 %s2131_s24, 10 }
  0x89   : > { %s1428_s10 = sshll.u32 %s354_s30, 6  ;;  %s2420_s2 = scalar_lea.hbm %s2675_s4, %s1497_s11 }
  0x8a   : > { %s356_s17 = scalar_lea.vmem [#allocation10], %s1428_s10  ;;  %s2429_s27 = scalar_lea.sflag [#allocation8], %s328_s0 }
  0x8b   : > { %s363_s22 = sshll.u32 %s356_s17, 4  ;;  %s1935_s11 = scalar_lea.hbm %s2674_s3, 3072  ;;  %s2422_s22 = int_to_ptr.vmem [resolvable:$true] %s363_s22 }
  0x8d   : > { %s1496_s6 = sshll.u32 %s335_s5, 10 }
  0x8e   : > { %s2427_s1 = scalar_lea.hbm %s2674_s3, %s1496_s6 }
  0x8f   : > { %s1931_s30 = scalar_lea.hbm %s2427_s1, 1024  ;;  %p1936_p8 = scmp.lt.u32.totalorder %s2427_s1, %s2674_s3 }
  0x90   : > { %p1932_p2 = scmp.ne.s32.totalorder %s2427_s1, %s1931_s30  ;;  %p1937_p10 = scmp.lt.u32.totalorder %s1935_s11, %s1931_s30 }
  0x91   : > { %p1939_p13 = scmp.lt.u32.totalorder %s1931_s30, %s2427_s1 }
  0x92   : > { %p1933_p4 = pnand %p1932_p2, %p2732_p0  ;;  %p1938_p7 = por %p1937_p10, %p1936_p8 }
  0x94   : > { %p1934_p6 = pneg %p1933_p4  ;;  %p1940_p3 = por %p1939_p13, %p1938_p7 }
  0x96   : > { %p1941_p12 = pnand %p1940_p3, %p1934_p6 }
  0x98   : > { %1944 = shalt.err (!%p1941_p12)
}
  0x99   : > { %s1945_s6 = scalar_lea.vmem %s2415_s28, 1024  ;;  %s2142_s0 = smov [#allocation7]  }
  0x9a   : > { %p1946_p5 = scmp.ne.s32.totalorder %s2415_s28, %s1945_s6  ;;  %s1949_s21 = sshll.u32 %s2142_s0, 4  ;;  %s1950_s21 = int_to_ptr.vmem [resolvable:$false] %s1949_s21 }
  0x9b   : > { %s1951_s9 = scalar_lea.vmem %s1950_s21, 2048  ;;  %p1952_p1 = scmp.lt.s32.totalorder %s2415_s28, %s1950_s21 }
  0x9c   : > { %p1947_p11 = pnand %p1946_p5, %p2732_p0  ;;  %p1953_p2 = scmp.lt.s32.totalorder %s1951_s9, %s1945_s6 }
  0x9e   : > { %p1948_p9 = pneg %p1947_p11  ;;  %p1954_p4 = por %p1953_p2, %p1952_p1 }
  0xa0   : > { %p1955_p8 = pnand %p1954_p4, %p1948_p9 }
  0xa2   : > { %1958 = shalt.err (!%p1955_p8)
}
  0xa3   : > { %s2143_s7 = smov 64   ;;  %s2144_s30 = smov 4  }
  0xa4   : > { %1711 = dma.hbm_to_vmem [thread:$0]  (%p2732_p0), %s2427_s1, 1024, %s2415_s28, %s2429_s27, %s2143_s7, %s2143_s7, %s2144_s30  }
  0xa5   : > { %s2458_s10 = scalar_lea.sflag [#allocation11], %s352_s13  ;;  %s1959_s5 = scalar_lea.hbm %s2420_s2, 1024 }
  0xa6   : > { %p1960_p6 = scmp.ne.s32.totalorder %s2420_s2, %s1959_s5  ;;  %p2733_p10 = scmp.ne.s32.totalorder %s2716_s16, 0 }
  0xa7   : > { %s1963_s12 = scalar_lea.hbm %s2675_s4, 3072  ;;  %p1964_p3 = scmp.lt.u32.totalorder %s2420_s2, %s2675_s4 }
  0xa8   : > { %p1961_p7 = pnand %p1960_p6, %p2733_p10  ;;  %p1965_p12 = scmp.lt.u32.totalorder %s1963_s12, %s1959_s5 }
  0xa9   : > { %p1967_p11 = scmp.lt.u32.totalorder %s1959_s5, %s2420_s2 }
  0xaa   : > { %p1962_p13 = pneg %p1961_p7  ;;  %p1966_p5 = por %p1965_p12, %p1964_p3 }
  0xac   : > { %p1968_p0 = por %p1967_p11, %p1966_p5 }
  0xae   : > { %p1969_p9 = pnand %p1968_p0, %p1962_p13 }
  0xb0   : > { %1972 = shalt.err (!%p1969_p9)
}
  0xb1   : > { %s1973_s23 = scalar_lea.vmem %s2422_s22, 1024  ;;  %s2145_s28 = smov [#allocation10]  }
  0xb2   : > { %p1974_p1 = scmp.ne.s32.totalorder %s2422_s22, %s1973_s23  ;;  %s1977_s13 = sshll.u32 %s2145_s28, 4  ;;  %s1978_s13 = int_to_ptr.vmem [resolvable:$false] %s1977_s13 }
  0xb3   : > { %s1979_s1 = scalar_lea.vmem %s1978_s13, 2048  ;;  %p1980_p8 = scmp.lt.s32.totalorder %s2422_s22, %s1978_s13 }
  0xb4   : > { %p1975_p2 = pnand %p1974_p1, %p2733_p10  ;;  %p1981_p6 = scmp.lt.s32.totalorder %s1979_s1, %s1973_s23 }
  0xb6   : > { %p1976_p4 = pneg %p1975_p2  ;;  %p1982_p7 = por %p1981_p6, %p1980_p8 }
  0xb8   : > { %p1983_p3 = pnand %p1982_p7, %p1976_p4 }
  0xba   : > { %1986 = shalt.err (!%p1983_p3)
}
  0xbb   : > { %1712 = dma.hbm_to_vmem [thread:$0]  (%p2733_p10), %s2420_s2, 1024, %s2422_s22, %s2458_s10, %s2143_s7, %s2143_s7, %s2144_s30  }
  0xbc PF: > { %p2734_p13 = scmp.ne.s32.totalorder %s2726_s8, 0 }
  0xbd   : > { %s2735_s27 = sld [smem:[#allocation21_spill]] (!%p2734_p13)  ;;  %s2736_s21 = sld [smem:[#allocation27_spill]] (!%p2734_p13) }
  0xbe   : > { %384 = sbr.rel (%p2734_p13) target bundleno = 919 (0x397), region = 78  ;;  %s387_s9 = sand.u32 (!%p2734_p13), 1, %s2111_s19  }
  0xbf   : > { %s1432_s11 = sshll.u32 (!%p2734_p13), %s387_s9, 5 }
  0xc0   : > { %s2489_s12 = scalar_lea.vmem (!%p2734_p13), [#allocation6], %s1432_s11 }
  0xc3   : > { %s393_s5 = sand.u32 (!%p2734_p13), 1, %s2735_s27   ;;  %p2737_p12 = scmp.ne.s32.totalorder (!%p2734_p13), %s2736_s21, 0 }
  0xc4   : > { %s1433_s17 = sshll.u32 (!%p2734_p13), %s393_s5, 6  ;;  %s394_s16 = scalar_lea.sflag (!%p2734_p13), [#allocation8], %s393_s5 }
  0xc5   : > { %s2491_s6 = scalar_lea.vmem [#allocation7], %s1433_s17 }
  0xc6   : > { %2070 = dma.done.wait (%p2737_p12), %s394_s16, 1024  }
  0xc7   : > { %2072 = vsyncadd (%p2737_p12), %s394_s16, 4294966272  ;;  %s402_s2 = sand.u32 1, %s2268_s26   ;;  %s404_s8 = sand.u32 1, %s2091_s14  }
  0xc8   : > { %s1434_s19 = sshll.u32 %s404_s8, 6  ;;  %s403_s22 = scalar_lea.sflag [#allocation11], %s402_s2 }
  0xc9   : > { %s2501_s7 = scalar_lea.vmem [#allocation10], %s1434_s19  ;;  %p2738_p10 = scmp.ne.s32.totalorder %s2717_s29, 0 }
  0xcb   : > { %2074 = dma.done.wait (%p2738_p10), %s403_s22, 1024  }
  0xcc   : > { %2076 = vsyncadd (%p2738_p10), %s403_s22, 4294966272  ;;  %p2739_p5 = scmp.eq.s32.totalorder %s2268_s26, 0 }
  0xce   : > { %2078 = dma.done.wait (%p2739_p5), [#allocation11], 2048   ;;  %p2740_p11 = pmov %p2739_p5 }
  0xcf   : > { %s2741_s30 = sld [smem:[#allocation23_spill]]  ;;  %s2742_s13 = sld [smem:[#allocation34_spill]] }
  0xd0   : > { %2080 = vsyncadd (%p2740_p11), [#allocation11], 4294965248  ;;  %s2517_s27 = scalar_lea.vmem [#allocation13], %s1434_s19  ;;  %s2743_s29 = sld [smem:[#allocation22_spill]] }
  0xd5   : > { %s1437_s10 = sshll.u32 %s2741_s30, 4 }
  0xd6   : > { %p463_p0 = scmp.lt.s32.totalorder %s1437_s10, 47  ;;  %p1439_p9 = scmp.ne.s32.totalorder %s2743_s29, 0 }
  0xd7   : > { %v2146_v4 = vmov (!%p1439_p9), 0.0  }
  0xd8   : > { %s2782_s10 = smov (!%p463_p0, %s1437_s10), 47  ;;  %473 = sbr.rel (%p1439_p9) target bundleno = 225 (0xe1), region = 98 }
  0xd9   : > { %s1438_s0 = sshll.u32 %s2782_s10, 3  ;;  %474 = vst [vmem:[#allocation2] sm:$0xff] (!%p1439_p9), %v2146_v4  ;;  %475 = vst [vmem:[#allocation2 + $0x8] sm:$0xff] (!%p1439_p9), %v2146_v4 }
  0xda   : > { %s2515_s1 = scalar_lea.vmem %s2742_s13, %s1438_s0  ;;  %476 = vst [vmem:[#allocation2 + $0x10] sm:$0xff] (!%p1439_p9), %v2146_v4  ;;  %477 = vst [vmem:[#allocation2 + $0x18] sm:$0xff] (!%p1439_p9), %v2146_v4 }
  0xdb   : > { %478 = vst [vmem:[#allocation2 + $0x20] sm:$0xff] (!%p1439_p9), %v2146_v4  ;;  %479 = vst [vmem:[#allocation2 + $0x28] sm:$0xff] (!%p1439_p9), %v2146_v4 }
  0xdc   : > { %480 = vst [vmem:[#allocation2 + $0x30] sm:$0xff] (!%p1439_p9), %v2146_v4  ;;  %481 = vst [vmem:[#allocation2 + $0x38] sm:$0xff] (!%p1439_p9), %v2146_v4 }
  0xdd   : > { %482 = vst [vmem:[#allocation2 + $0x40] sm:$0xff] (!%p1439_p9), %v2146_v4  ;;  %483 = vst [vmem:[#allocation2 + $0x48] sm:$0xff] (!%p1439_p9), %v2146_v4 }
  0xde   : > { %484 = vst [vmem:[#allocation2 + $0x50] sm:$0xff] (!%p1439_p9), %v2146_v4  ;;  %485 = vst [vmem:[#allocation2 + $0x58] sm:$0xff] (!%p1439_p9), %v2146_v4 }
  0xdf   : > { %486 = vst [vmem:[#allocation2 + $0x60] sm:$0xff] %v2146_v4  ;;  %487 = vst [vmem:[#allocation2 + $0x68] sm:$0xff] %v2146_v4 }
  0xe0   : > { %488 = vst [vmem:[#allocation2 + $0x70] sm:$0xff] %v2146_v4  ;;  %489 = vst [vmem:[#allocation2 + $0x78] sm:$0xff] %v2146_v4 }
  0xe1 PF: > { %s2744_s26 = sld [smem:[#allocation23_spill]]  ;;  %s2745_s9 = sld [smem:[#allocation22_spill]] }
  0xe7   : > { %s490_s21 = sld [smem:[#allocation4 + %s2744_s26]] }
  0xed   : > { %p1440_p1 = scmp.ge.s32.totalorder %s2745_s9, %s490_s21 }
  0xee   : > { %v1845_v5 = vld [vmem:[%s2491_s6] sm:$0xff] (!%p1440_p1)   ;;  %v1846_v6 = vld [vmem:[%s2491_s6 + $0x8] sm:$0xff] (!%p1440_p1)   ;;  %v1847_v7 = vld [vmem:[%s2491_s6 + $0x10] sm:$0xff] (!%p1440_p1)  }
  0xef   : > { %494 = sbr.rel (%p1440_p1) target bundleno = 497 (0x1f1), region = 102  ;;  %1642 = vmatprep.subr.bf16.mxu0 (!%p1440_p1), %v1845_v5  ;;  %1674 = vmatprep.subr.bf16.mxu1 (!%p1440_p1), %v1845_v5  ;;  %v1848_v8 = vld [vmem:[%s2491_s6 + $0x18] sm:$0xff] (!%p1440_p1)   ;;  %v511_v9 = vld [vmem:[%s2489_s12] sm:$0xff] (!%p1440_p1)  ;;  %v513_v10 = vld [vmem:[%s2489_s12 + $0x10] sm:$0xff] (!%p1440_p1) }
  0xf0   : > { %1643 = vmatpush3.bf16.msra.mxu0 (!%p1440_p1), %v1845_v5  ;;  %1682 = vmatpush3.bf16.msra.mxu1 (!%p1440_p1), %v1845_v5  ;;  %v515_v11 = vunpack.c.l.s8.bf16 (!%p1440_p1), %v511_v9  ;;  %v519_v12 = vunpack.c.l.s8.bf16 (!%p1440_p1), %v513_v10  ;;  %v1849_v13 = vld [vmem:[%s2491_s6 + $0x20] sm:$0xff] (!%p1440_p1)   ;;  %v1850_v14 = vld [vmem:[%s2491_s6 + $0x28] sm:$0xff] (!%p1440_p1)   ;;  %v1851_v15 = vld [vmem:[%s2491_s6 + $0x30] sm:$0xff] (!%p1440_p1)   ;;  %v516_v19 = vunpack.c.h.s8.bf16 (!%p1440_p1), %v511_v9  ;;  %v520_v20 = vunpack.c.h.s8.bf16 (!%p1440_p1), %v513_v10 }
  0xf1   : > { %1644 = vmatprep.subr.bf16.mxu0 (!%p1440_p1), %v1846_v6  ;;  %1675 = vmatprep.subr.bf16.mxu1 (!%p1440_p1), %v1846_v6  ;;  %v1852_v16 = vld [vmem:[%s2491_s6 + $0x38] sm:$0xff] (!%p1440_p1)   ;;  %v512_v17 = vld [vmem:[%s2489_s12 + $0x8] sm:$0xff] (!%p1440_p1)  ;;  %v497_v25 = vld [vmem:[#allocation2 + $0x10] sm:$0xff] (!%p1440_p1) }
  0xf2   : > { %1658 = vmatprep.mubr.bf16.mxu0 (!%p1440_p1), %v515_v11  ;;  %1666 = vmatprep.mubr.bf16.mxu1 (!%p1440_p1), %v519_v12  ;;  %v514_v18 = vld [vmem:[%s2489_s12 + $0x18] sm:$0xff] (!%p1440_p1)  ;;  %v517_v21 = vunpack.c.l.s8.bf16 (!%p1440_p1), %v512_v17  ;;  %v518_v23 = vunpack.c.h.s8.bf16 (!%p1440_p1), %v512_v17  ;;  %v505_v26 = vld [vmem:[#allocation2 + $0x50] sm:$0xff] (!%p1440_p1)  ;;  %v495_v27 = vld [vmem:[#allocation2] sm:$0xff] (!%p1440_p1) }
  0xf3   : > { %v521_v22 = vunpack.c.l.s8.bf16 (!%p1440_p1), %v514_v18  ;;  %v522_v24 = vunpack.c.h.s8.bf16 (!%p1440_p1), %v514_v18  ;;  %v503_v28 = vld [vmem:[#allocation2 + $0x40] sm:$0xff] (!%p1440_p1)  ;;  %v498_v31 = vld [vmem:[#allocation2 + $0x18] sm:$0xff] (!%p1440_p1)  ;;  %v496_v37 = vld [vmem:[#allocation2 + $0x8] sm:$0xff] (!%p1440_p1) }
  0xf4   : > { %1645 = vmatpush3.bf16.msra.mxu0 (!%p1440_p1), %v1846_v6  ;;  %1683 = vmatpush3.bf16.msra.mxu1 (!%p1440_p1), %v1846_v6  ;;  %v506_v32 = vld [vmem:[#allocation2 + $0x58] sm:$0xff] (!%p1440_p1)  ;;  %v504_v38 = vld [vmem:[#allocation2 + $0x48] sm:$0xff] (!%p1440_p1)  ;;  %v501_v49 = vld [vmem:[#allocation2 + $0x30] sm:$0xff] (!%p1440_p1) }
  0xf5   : > { %1646 = vmatprep.subr.bf16.mxu0 (!%p1440_p1), %v1847_v7  ;;  %1676 = vmatprep.subr.bf16.mxu1 (!%p1440_p1), %v1847_v7  ;;  %v509_v50 = vld [vmem:[#allocation2 + $0x70] sm:$0xff] (!%p1440_p1)  ;;  %v499_v51 = vld [vmem:[#allocation2 + $0x20] sm:$0xff] (!%p1440_p1)  ;;  %v502_v55 = vld [vmem:[#allocation2 + $0x38] sm:$0xff] (!%p1440_p1) }
  0xf6   : > { %v507_v52 = vld [vmem:[#allocation2 + $0x60] sm:$0xff]  ;;  %v510_v56 = vld [vmem:[#allocation2 + $0x78] sm:$0xff]  ;;  %v500_v61 = vld [vmem:[#allocation2 + $0x28] sm:$0xff] }
  0xf7   : > { %v508_v62 = vld [vmem:[#allocation2 + $0x68] sm:$0xff] }
  0xf8   : > { %1647 = vmatpush3.bf16.msra.mxu0 %v1847_v7  ;;  %1684 = vmatpush3.bf16.msra.mxu1 %v1847_v7 }
  0xf9   : > { %1648 = vmatprep.subr.bf16.mxu0 %v1848_v8  ;;  %1677 = vmatprep.subr.bf16.mxu1 %v1848_v8 }
  0xfc   : > { %1649 = vmatpush3.bf16.msra.mxu0 %v1848_v8  ;;  %1685 = vmatpush3.bf16.msra.mxu1 %v1848_v8 }
  0xfd   : > { %1650 = vmatprep.subr.bf16.mxu0 %v1849_v13  ;;  %1678 = vmatprep.subr.bf16.mxu1 %v1849_v13 }
 0x100   : > { %1651 = vmatpush3.bf16.msra.mxu0 %v1849_v13  ;;  %1686 = vmatpush3.bf16.msra.mxu1 %v1849_v13 }
 0x101   : > { %1652 = vmatprep.subr.bf16.mxu0 %v1850_v14  ;;  %1679 = vmatprep.subr.bf16.mxu1 %v1850_v14 }
 0x104   : > { %1653 = vmatpush3.bf16.msra.mxu0 %v1850_v14  ;;  %1687 = vmatpush3.bf16.msra.mxu1 %v1850_v14 }
 0x105   : > { %1654 = vmatprep.subr.bf16.mxu0 %v1851_v15  ;;  %1680 = vmatprep.subr.bf16.mxu1 %v1851_v15 }
 0x108   : > { %1655 = vmatpush3.bf16.msra.mxu0 %v1851_v15  ;;  %1688 = vmatpush3.bf16.msra.mxu1 %v1851_v15 }
 0x109   : > { %1656 = vmatprep.subr.bf16.mxu0 %v1852_v16  ;;  %1681 = vmatprep.subr.bf16.mxu1 %v1852_v16 }
 0x10c   : > { %1657 = vmatpush3.bf16.msra.mxu0 %v1852_v16  ;;  %1689 = vmatpush3.bf16.msra.mxu1 %v1852_v16 }
 0x10f   : > { %1659 = vmatmul.mubr.bf16.vlgmr.msra.gmra.mrb[0].mxu0 %v516_v19  ;;  %1667 = vmatmul.mubr.bf16.vlgmr.msra.gmra.mrb[0].mxu1 %v520_v20 }
 0x110   : > { %1662 = vmatprep.mubr.bf16.mxu0 %v517_v21  ;;  %1670 = vmatprep.mubr.bf16.mxu1 %v521_v22 }
 0x117   : > { %1663 = vmatmul.mubr.bf16.gmra.mrb[4].mxu0 %v518_v23  ;;  %1671 = vmatmul.mubr.bf16.gmra.mrb[4].mxu1 %v522_v24 }
 0x1e2   : > { %v1660_v29 = vpop.f32.mrb[0].mxu0  ;;  %v1668_v30 = vpop.f32.mrb[0].mxu1 }
 0x1e3   : > { %v686_v33 = vadd.f32 %v1660_v29, %v497_v25  ;;  %v694_v34 = vadd.f32 %v1668_v30, %v505_v26  ;;  %v621_v35 = vpop.f32.mrb[1].mxu0  ;;  %v653_v36 = vpop.f32.mrb[1].mxu1 }
 0x1e4   : > { %v684_v39 = vadd.f32 %v621_v35, %v495_v27  ;;  %v692_v40 = vadd.f32 %v653_v36, %v503_v28  ;;  %v1661_v41 = vpop.f32.mrb[2].mxu0  ;;  %v1669_v42 = vpop.f32.mrb[2].mxu1 }
 0x1e5   : > { %702 = vst [vmem:[#allocation2 + $0x10] sm:$0xff] %v686_v33  ;;  %710 = vst [vmem:[#allocation2 + $0x50] sm:$0xff] %v694_v34  ;;  %v687_v43 = vadd.f32 %v1661_v41, %v498_v31  ;;  %v695_v44 = vadd.f32 %v1669_v42, %v506_v32  ;;  %v624_v45 = vpop.f32.mrb[3].mxu0  ;;  %v656_v46 = vpop.f32.mrb[3].mxu1 }
 0x1e6   : > { %700 = vst [vmem:[#allocation2] sm:$0xff] %v684_v39  ;;  %708 = vst [vmem:[#allocation2 + $0x40] sm:$0xff] %v692_v40  ;;  %v685_v47 = vadd.f32 %v624_v45, %v496_v37  ;;  %v693_v48 = vadd.f32 %v656_v46, %v504_v38 }
 0x1e7   : > { %703 = vst [vmem:[#allocation2 + $0x18] sm:$0xff] %v687_v43  ;;  %711 = vst [vmem:[#allocation2 + $0x58] sm:$0xff] %v695_v44 }
 0x1e8   : > { %701 = vst [vmem:[#allocation2 + $0x8] sm:$0xff] %v685_v47  ;;  %709 = vst [vmem:[#allocation2 + $0x48] sm:$0xff] %v693_v48 }
 0x1ea   : > { %v1664_v53 = vpop.f32.mrb[4].mxu0  ;;  %v1672_v54 = vpop.f32.mrb[4].mxu1 }
 0x1eb   : > { %v690_v57 = vadd.f32 %v1664_v53, %v501_v49  ;;  %v698_v58 = vadd.f32 %v1672_v54, %v509_v50  ;;  %v637_v59 = vpop.f32.mrb[5].mxu0  ;;  %v669_v60 = vpop.f32.mrb[5].mxu1 }
 0x1ec   : > { %v688_v63 = vadd.f32 %v637_v59, %v499_v51  ;;  %v696_v0 = vadd.f32 %v669_v60, %v507_v52  ;;  %v1665_v1 = vpop.f32.mrb[6].mxu0  ;;  %v1673_v2 = vpop.f32.mrb[6].mxu1 }
 0x1ed   : > { %706 = vst [vmem:[#allocation2 + $0x30] sm:$0xff] %v690_v57  ;;  %714 = vst [vmem:[#allocation2 + $0x70] sm:$0xff] %v698_v58  ;;  %v691_v3 = vadd.f32 %v1665_v1, %v502_v55  ;;  %v699_v4 = vadd.f32 %v1673_v2, %v510_v56  ;;  %v640_v5 = vpop.f32.mrb[7].mxu0  ;;  %v672_v6 = vpop.f32.mrb[7].mxu1 }
 0x1ee   : > { %704 = vst [vmem:[#allocation2 + $0x20] sm:$0xff] %v688_v63  ;;  %712 = vst [vmem:[#allocation2 + $0x60] sm:$0xff] %v696_v0  ;;  %v689_v7 = vadd.f32 %v640_v5, %v500_v61  ;;  %v697_v8 = vadd.f32 %v672_v6, %v508_v62 }
 0x1ef   : > { %707 = vst [vmem:[#allocation2 + $0x38] sm:$0xff] %v691_v3  ;;  %715 = vst [vmem:[#allocation2 + $0x78] sm:$0xff] %v699_v4 }
 0x1f0   : > { %705 = vst [vmem:[#allocation2 + $0x28] sm:$0xff] %v689_v7  ;;  %713 = vst [vmem:[#allocation2 + $0x68] sm:$0xff] %v697_v8 }
 0x1f1 PF: > { %s2746_s5 = sld [smem:[#allocation22_spill]] }
 0x1f7   : > { %p1449_p2 = scmp.ne.s32.totalorder %s2746_s5, 1 }
 0x1f8   : > { %v744_v9 = vld [vmem:[%s2515_s1 + $0x40] sm:$0xff] (!%p1449_p2)  ;;  %v2147_v11 = vmov (!%p1449_p2), 0   ;;  %v745_v12 = vld [vmem:[%s2515_s1 + $0x48] sm:$0xff] (!%p1449_p2)  ;;  %v739_v14 = vld [vmem:[%s2515_s1 + $0x18] sm:$0xff] (!%p1449_p2)  ;;  %s2747_s12 = sld [smem:[#allocation36_spill]] (!%p1449_p2) }
 0x1f9   : > { %719 = sbr.rel (%p1449_p2) target bundleno = 891 (0x37b), region = 106  ;;  %v736_v10 = vld [vmem:[%s2515_s1] sm:$0xff] (!%p1449_p2)  ;;  %1854 = vset.pattern.permute.xlu1 (!%p1449_p2), %v2147_v11  ;;  %1853 = vset.pattern.permute.xlu0 (!%p1449_p2), %v2147_v11  ;;  %v737_v13 = vld [vmem:[%s2515_s1 + $0x8] sm:$0xff] (!%p1449_p2)  ;;  %v738_v15 = vld [vmem:[%s2515_s1 + $0x10] sm:$0xff] (!%p1449_p2) }
 0x1fa   : > { %794 = vperm.xlu1 (!%p1449_p2), %1854, %v744_v9   ;;  %754 = vperm.xlu0 (!%p1449_p2), %1853, %v736_v10   ;;  %v1855_v16 = vld [vmem:[#allocation12 + $0x40] sm:$0xff] (!%p1449_p2)   ;;  %v1857_v18 = vld [vmem:[#allocation12 + $0x48] sm:$0xff] (!%p1449_p2)   ;;  %v747_v19 = vld [vmem:[%s2515_s1 + $0x58] sm:$0xff] (!%p1449_p2) }
 0x1fb   : > { %v1856_v17 = vld [vmem:[#allocation12] sm:$0xff] (!%p1449_p2)   ;;  %1578 = vmatprep.subr.bf16.mxu0 (!%p1449_p2), %v1855_v16  ;;  %1690 = vmatprep.subr.bf16.mxu1 (!%p1449_p2), %v1855_v16  ;;  %v1858_v20 = vld [vmem:[#allocation12 + $0x8] sm:$0xff] (!%p1449_p2)   ;;  %v746_v21 = vld [vmem:[%s2515_s1 + $0x50] sm:$0xff] (!%p1449_p2) }
 0x1fc   : > { %1579 = vmatpush3.bf16.msra.mxu0 (!%p1449_p2), %v1856_v17  ;;  %1698 = vmatpush3.bf16.msra.mxu1 (!%p1449_p2), %v1856_v17  ;;  %v1859_v22 = vld [vmem:[#allocation12 + $0x50] sm:$0xff] (!%p1449_p2)   ;;  %v741_v23 = vld [vmem:[%s2515_s1 + $0x28] sm:$0xff] (!%p1449_p2)  ;;  %v740_v25 = vld [vmem:[%s2515_s1 + $0x20] sm:$0xff] (!%p1449_p2) }
 0x1fd   : > { %1580 = vmatprep.subr.bf16.mxu0 (!%p1449_p2), %v1857_v18  ;;  %1691 = vmatprep.subr.bf16.mxu1 (!%p1449_p2), %v1857_v18  ;;  %v1860_v24 = vld [vmem:[#allocation12 + $0x10] sm:$0xff] (!%p1449_p2)   ;;  %v1861_v26 = vld [vmem:[#allocation12 + $0x58] sm:$0xff] (!%p1449_p2)   ;;  %v749_v27 = vld [vmem:[%s2515_s1 + $0x68] sm:$0xff] (!%p1449_p2) }
 0x1fe   : > { %799 = vperm.xlu1 (!%p1449_p2), %1854, %v745_v12   ;;  %759 = vperm.xlu0 (!%p1449_p2), %1853, %v737_v13   ;;  %v1862_v28 = vld [vmem:[#allocation12 + $0x18] sm:$0xff] (!%p1449_p2)   ;;  %v748_v29 = vld [vmem:[%s2515_s1 + $0x60] sm:$0xff] (!%p1449_p2)  ;;  %v742_v33 = vld [vmem:[%s2515_s1 + $0x30] sm:$0xff] (!%p1449_p2) }
 0x1ff   : > { %v1863_v30 = vld [vmem:[#allocation12 + $0x60] sm:$0xff] (!%p1449_p2)   ;;  %v743_v31 = vld [vmem:[%s2515_s1 + $0x38] sm:$0xff] (!%p1449_p2)  ;;  %v1865_v34 = vld [vmem:[#allocation12 + $0x68] sm:$0xff] (!%p1449_p2)  }
 0x200   : > { %1581 = vmatpush3.bf16.msra.mxu0 %v1858_v20  ;;  %1699 = vmatpush3.bf16.msra.mxu1 %v1858_v20  ;;  %v1864_v32 = vld [vmem:[#allocation12 + $0x20] sm:$0xff]   ;;  %v1866_v37 = vld [vmem:[#allocation12 + $0x28] sm:$0xff]   ;;  %v751_v38 = vld [vmem:[%s2515_s1 + $0x78] sm:$0xff] }
 0x201   : > { %1582 = vmatprep.subr.bf16.mxu0 %v1859_v22  ;;  %1692 = vmatprep.subr.bf16.mxu1 %v1859_v22  ;;  %v1871_v35 = vld [vmem:[%s2501_s7] sm:$0xff]   ;;  %v750_v39 = vld [vmem:[%s2515_s1 + $0x70] sm:$0xff]  ;;  %v1869_v42 = vld [vmem:[#allocation12 + $0x78] sm:$0xff]  }
 0x202   : > { %769 = vperm.xlu1 %1854, %v739_v14   ;;  %764 = vperm.xlu0 %1853, %v738_v15   ;;  %v1872_v36 = vld [vmem:[%s2501_s7 + $0x20] sm:$0xff]   ;;  %v1867_v40 = vld [vmem:[#allocation12 + $0x70] sm:$0xff]   ;;  %v1870_v43 = vld [vmem:[#allocation12 + $0x38] sm:$0xff]  }
 0x203   : > { %1087 = vmatprep.mubr.bf16.mxu0 %v1871_v35  ;;  %1119 = vmatprep.mubr.bf16.mxu1 %v1872_v36  ;;  %v1868_v41 = vld [vmem:[#allocation12 + $0x30] sm:$0xff]   ;;  %v728_v46 = vld [vmem:[#allocation2 + $0x40] sm:$0xff]  ;;  %v729_v48 = vld [vmem:[#allocation2 + $0x48] sm:$0xff] }
 0x204   : > { %1583 = vmatpush3.bf16.msra.mxu0 %v1860_v24  ;;  %1700 = vmatpush3.bf16.msra.mxu1 %v1860_v24  ;;  %v720_v47 = vld [vmem:[#allocation2] sm:$0xff]  ;;  %v721_v49 = vld [vmem:[#allocation2 + $0x8] sm:$0xff]  ;;  %v723_v61 = vld [vmem:[#allocation2 + $0x18] sm:$0xff] }
 0x205   : > { %1584 = vmatprep.subr.bf16.mxu0 %v1861_v26  ;;  %1693 = vmatprep.subr.bf16.mxu1 %v1861_v26  ;;  %v1873_v56 = vld [vmem:[%s2501_s7 + $0x8] sm:$0xff]   ;;  %v722_v63 = vld [vmem:[#allocation2 + $0x10] sm:$0xff]  ;;  %v731_v0 = vld [vmem:[#allocation2 + $0x58] sm:$0xff] }
 0x206   : > { %809 = vperm.xlu1 %1854, %v747_v19   ;;  %804 = vperm.xlu0 %1853, %v746_v21   ;;  %v1874_v57 = vld [vmem:[%s2501_s7 + $0x28] sm:$0xff]   ;;  %v730_v1 = vld [vmem:[#allocation2 + $0x50] sm:$0xff]  ;;  %v724_v15 = vld [vmem:[#allocation2 + $0x20] sm:$0xff] }
 0x207   : > { %v1875_v8 = vld [vmem:[%s2501_s7 + $0x10] sm:$0xff]   ;;  %v725_v13 = vld [vmem:[#allocation2 + $0x28] sm:$0xff]  ;;  %v732_v17 = vld [vmem:[#allocation2 + $0x60] sm:$0xff] }
 0x208   : > { %1585 = vmatpush3.bf16.msra.mxu0 %v1862_v28  ;;  %1701 = vmatpush3.bf16.msra.mxu1 %v1862_v28  ;;  %v1876_v9 = vld [vmem:[%s2501_s7 + $0x30] sm:$0xff]   ;;  %v733_v16 = vld [vmem:[#allocation2 + $0x68] sm:$0xff]  ;;  %v1877_v24 = vld [vmem:[%s2501_s7 + $0x18] sm:$0xff]  }
 0x209   : > { %1586 = vmatprep.subr.bf16.mxu0 %v1863_v30  ;;  %1694 = vmatprep.subr.bf16.mxu1 %v1863_v30 }
 0x20a   : > { %779 = vperm.xlu1 %1854, %v741_v23   ;;  %774 = vperm.xlu0 %1853, %v740_v25   ;;  %v1878_v25 = vld [vmem:[%s2501_s7 + $0x38] sm:$0xff]  }
 0x20c   : > { %1587 = vmatpush3.bf16.msra.mxu0 %v1864_v32  ;;  %1702 = vmatpush3.bf16.msra.mxu1 %v1864_v32  ;;  %v735_v32 = vld [vmem:[#allocation2 + $0x78] sm:$0xff] }
 0x20d   : > { %1588 = vmatprep.subr.bf16.mxu0 %v1865_v34  ;;  %1695 = vmatprep.subr.bf16.mxu1 %v1865_v34 }
 0x20e   : > { %819 = vperm.xlu1 %1854, %v749_v27   ;;  %814 = vperm.xlu0 %1853, %v748_v29   ;;  %v727_v29 = vld [vmem:[#allocation2 + $0x38] sm:$0xff] }
 0x210   : > { %1589 = vmatpush3.bf16.msra.mxu0 %v1866_v37  ;;  %1703 = vmatpush3.bf16.msra.mxu1 %v1866_v37 }
 0x211   : > { %1590 = vmatprep.subr.bf16.mxu0 %v1867_v40  ;;  %1696 = vmatprep.subr.bf16.mxu1 %v1867_v40 }
 0x212   : > { %789 = vperm.xlu1 %1854, %v743_v31   ;;  %784 = vperm.xlu0 %1853, %v742_v33   ;;  %v726_v31 = vld [vmem:[#allocation2 + $0x30] sm:$0xff] }
 0x213   : > { %v734_v33 = vld [vmem:[#allocation2 + $0x70] sm:$0xff] }
 0x214   : > { %1591 = vmatpush3.bf16.msra.mxu0 %v1868_v41  ;;  %1704 = vmatpush3.bf16.msra.mxu1 %v1868_v41 }
 0x215   : > { %1592 = vmatprep.subr.bf16.mxu0 %v1869_v42  ;;  %1697 = vmatprep.subr.bf16.mxu1 %v1869_v42 }
 0x216   : > { %829 = vperm.xlu1 %1854, %v751_v38   ;;  %824 = vperm.xlu0 %1853, %v750_v39  }
 0x218   : > { %1593 = vmatpush3.bf16.msra.mxu0 %v1870_v43  ;;  %1705 = vmatpush3.bf16.msra.mxu1 %v1870_v43 }
 0x279   : > { %v795_v44 = vpop.permute.xlu1 %794  ;;  %v755_v45 = vpop.permute.xlu0 %754 }
 0x27a   : > { %v840_v52 = vmul.f32 %v795_v44, %v728_v46  ;;  %v832_v53 = vmul.f32 %v755_v45, %v720_v47  ;;  %v2562_v44 = vld [vmem:[%s2747_s12] ss:$0 sm:$0xff] }
 0x27d   : > { %v800_v50 = vpop.permute.xlu1 %799  ;;  %v760_v51 = vpop.permute.xlu0 %759 }
 0x27e   : > { %v841_v54 = vmul.f32 %v800_v50, %v729_v48  ;;  %v833_v55 = vmul.f32 %v760_v51, %v721_v49 }
 0x280   : > { %v852_v58 = vpack.c.bf16 %v841_v54, %v840_v52  ;;  %v848_v59 = vpack.c.bf16 %v833_v55, %v832_v53 }
 0x281   : > { %v770_v60 = vpop.permute.xlu1 %769  ;;  %v765_v62 = vpop.permute.xlu0 %764 }
 0x282   : > { %1088 = vmatmul.mubr.bf16.vlgmr.msra.gmra.mrb[0].mxu0 %v848_v59  ;;  %1120 = vmatmul.mubr.bf16.vlgmr.msra.gmra.mrb[0].mxu1 %v852_v58  ;;  %v835_v2 = vmul.f32 %v770_v60, %v723_v61  ;;  %v834_v3 = vmul.f32 %v765_v62, %v722_v63 }
 0x283   : > { %1095 = vmatprep.mubr.bf16.mxu0 %v1873_v56  ;;  %1127 = vmatprep.mubr.bf16.mxu1 %v1874_v57 }
 0x284   : > { %v849_v10 = vpack.c.bf16 %v835_v2, %v834_v3 }
 0x285   : > { %v810_v4 = vpop.permute.xlu1 %809  ;;  %v805_v5 = vpop.permute.xlu0 %804 }
 0x286   : > { %v843_v6 = vmul.f32 %v810_v4, %v731_v0  ;;  %v842_v7 = vmul.f32 %v805_v5, %v730_v1 }
 0x288   : > { %v853_v11 = vpack.c.bf16 %v843_v6, %v842_v7 }
 0x289   : > { %v780_v12 = vpop.permute.xlu1 %779  ;;  %v775_v14 = vpop.permute.xlu0 %774 }
 0x28a   : > { %1096 = vmatmul.mubr.bf16.gmra.mrb[4].mxu0 %v849_v10  ;;  %1128 = vmatmul.mubr.bf16.gmra.mrb[4].mxu1 %v853_v11  ;;  %v837_v18 = vmul.f32 %v780_v12, %v725_v13  ;;  %v836_v19 = vmul.f32 %v775_v14, %v724_v15 }
 0x28b   : > { %1103 = vmatprep.mubr.bf16.mxu0 %v1875_v8  ;;  %1135 = vmatprep.mubr.bf16.mxu1 %v1876_v9 }
 0x28c   : > { %v850_v26 = vpack.c.bf16 %v837_v18, %v836_v19 }
 0x28d   : > { %v820_v20 = vpop.permute.xlu1 %819  ;;  %v815_v21 = vpop.permute.xlu0 %814 }
 0x28e   : > { %v845_v22 = vmul.f32 %v820_v20, %v733_v16  ;;  %v844_v23 = vmul.f32 %v815_v21, %v732_v17 }
 0x290   : > { %v854_v27 = vpack.c.bf16 %v845_v22, %v844_v23 }
 0x291   : > { %v790_v28 = vpop.permute.xlu1 %789  ;;  %v785_v30 = vpop.permute.xlu0 %784 }
 0x292   : > { %1104 = vmatmul.mubr.bf16.gmra.mrb[8].mxu0 %v850_v26  ;;  %1136 = vmatmul.mubr.bf16.gmra.mrb[8].mxu1 %v854_v27  ;;  %v839_v34 = vmul.f32 %v790_v28, %v727_v29  ;;  %v838_v35 = vmul.f32 %v785_v30, %v726_v31 }
 0x293   : > { %1111 = vmatprep.mubr.bf16.mxu0 %v1877_v24  ;;  %1143 = vmatprep.mubr.bf16.mxu1 %v1878_v25 }
 0x294   : > { %v851_v40 = vpack.c.bf16 %v839_v34, %v838_v35 }
 0x295   : > { %v830_v36 = vpop.permute.xlu1 %829  ;;  %v825_v37 = vpop.permute.xlu0 %824 }
 0x296   : > { %v847_v38 = vmul.f32 %v830_v36, %v735_v32  ;;  %v846_v39 = vmul.f32 %v825_v37, %v734_v33 }
 0x298   : > { %v855_v41 = vpack.c.bf16 %v847_v38, %v846_v39 }
 0x29a   : > { %1112 = vmatmul.mubr.bf16.gmra.mrb[12].mxu0 %v851_v40  ;;  %1144 = vmatmul.mubr.bf16.gmra.mrb[12].mxu1 %v855_v41 }
 0x355   : > { %v1594_v42 = vpop.f32.mrb[0].mxu0  ;;  %v1618_v43 = vpop.f32.mrb[0].mxu1 }
 0x356   : > { %v1595_v45 = vpop.f32.mrb[1].mxu0  ;;  %v1619_v46 = vpop.f32.mrb[1].mxu1 }
 0x357   : > { %v1596_v47 = vadd.f32 %v1595_v45, %v1594_v42  ;;  %v1620_v48 = vadd.f32 %v1619_v46, %v1618_v43  ;;  %v1597_v49 = vpop.f32.mrb[2].mxu0  ;;  %v1621_v50 = vpop.f32.mrb[2].mxu1 }
 0x358   : > { %v1598_v51 = vpop.f32.mrb[3].mxu0  ;;  %v1622_v52 = vpop.f32.mrb[3].mxu1 }
 0x359   : > { %v1090_v53 = vadd.f32 %v1596_v47, %v2562_v44  ;;  %v1122_v54 = vadd.f32 %v1620_v48, %v2562_v44  ;;  %v1599_v55 = vadd.f32 %v1598_v51, %v1597_v49  ;;  %v1623_v56 = vadd.f32 %v1622_v52, %v1621_v50 }
 0x35b   : > { %v1093_v57 = vadd.f32 %v1599_v55, %v2562_v44  ;;  %v1125_v58 = vadd.f32 %v1623_v56, %v2562_v44  ;;  %v1152_v59 = vmax.f32 %v1090_v53, 0.0  ;;  %v1160_v60 = vmax.f32 %v1122_v54, 0.0 }
 0x35d   : > { %v1153_v61 = vmax.f32 %v1093_v57, 0.0  ;;  %v1161_v62 = vmax.f32 %v1125_v58, 0.0  ;;  %v1600_v63 = vpop.f32.mrb[4].mxu0  ;;  %v1624_v0 = vpop.f32.mrb[4].mxu1 }
 0x35e   : > { %v1601_v1 = vpop.f32.mrb[5].mxu0  ;;  %v1625_v2 = vpop.f32.mrb[5].mxu1 }
 0x35f   : > { %v1518_v3 = vpack.c.bf16 %v1153_v61, %v1152_v59  ;;  %v1538_v4 = vpack.c.bf16 %v1161_v62, %v1160_v60  ;;  %v1602_v5 = vadd.f32 %v1601_v1, %v1600_v63  ;;  %v1626_v6 = vadd.f32 %v1625_v2, %v1624_v0  ;;  %v1603_v7 = vpop.f32.mrb[6].mxu0  ;;  %v1627_v8 = vpop.f32.mrb[6].mxu1 }
 0x360   : > { %v1604_v9 = vpop.f32.mrb[7].mxu0  ;;  %v1628_v10 = vpop.f32.mrb[7].mxu1 }
 0x361   : > { %1519 = vst [vmem:[%s2517_s27] sm:$0xff] %v1518_v3   ;;  %1558 = vst [vmem:[%s2517_s27 + $0x20] sm:$0xff] %v1538_v4   ;;  %v1098_v11 = vadd.f32 %v1602_v5, %v2562_v44  ;;  %v1130_v12 = vadd.f32 %v1626_v6, %v2562_v44  ;;  %v1605_v13 = vadd.f32 %v1604_v9, %v1603_v7 }
 0x362   : > { %v1629_v14 = vadd.f32 %v1628_v10, %v1627_v8 }
 0x363   : > { %v1101_v15 = vadd.f32 %v1605_v13, %v2562_v44  ;;  %v1154_v17 = vmax.f32 %v1098_v11, 0.0  ;;  %v1162_v18 = vmax.f32 %v1130_v12, 0.0 }
 0x364   : > { %v1133_v16 = vadd.f32 %v1629_v14, %v2562_v44 }
 0x365   : > { %v1155_v19 = vmax.f32 %v1101_v15, 0.0  ;;  %v1606_v21 = vpop.f32.mrb[8].mxu0  ;;  %v1630_v22 = vpop.f32.mrb[8].mxu1 }
 0x366   : > { %v1163_v20 = vmax.f32 %v1133_v16, 0.0  ;;  %v1607_v23 = vpop.f32.mrb[9].mxu0  ;;  %v1631_v24 = vpop.f32.mrb[9].mxu1 }
 0x367   : > { %v1523_v25 = vpack.c.bf16 %v1155_v19, %v1154_v17  ;;  %v1608_v27 = vadd.f32 %v1607_v23, %v1606_v21  ;;  %v1632_v28 = vadd.f32 %v1631_v24, %v1630_v22  ;;  %v1609_v29 = vpop.f32.mrb[10].mxu0  ;;  %v1633_v30 = vpop.f32.mrb[10].mxu1 }
 0x368   : > { %v1543_v26 = vpack.c.bf16 %v1163_v20, %v1162_v18  ;;  %v1610_v31 = vpop.f32.mrb[11].mxu0  ;;  %v1634_v32 = vpop.f32.mrb[11].mxu1 }
 0x369   : > { %1555 = vst [vmem:[%s2517_s27 + $0x8] sm:$0xff] %v1523_v25   ;;  %v1106_v33 = vadd.f32 %v1608_v27, %v2562_v44  ;;  %v1138_v34 = vadd.f32 %v1632_v28, %v2562_v44  ;;  %v1611_v35 = vadd.f32 %v1610_v31, %v1609_v29  ;;  %v1635_v36 = vadd.f32 %v1634_v32, %v1633_v30 }
 0x36a   : > { %1559 = vst [vmem:[%s2517_s27 + $0x28] sm:$0xff] %v1543_v26  }
 0x36b   : > { %v1109_v37 = vadd.f32 %v1611_v35, %v2562_v44  ;;  %v1141_v38 = vadd.f32 %v1635_v36, %v2562_v44  ;;  %v1156_v39 = vmax.f32 %v1106_v33, 0.0  ;;  %v1164_v40 = vmax.f32 %v1138_v34, 0.0 }
 0x36d   : > { %v1157_v41 = vmax.f32 %v1109_v37, 0.0  ;;  %v1165_v42 = vmax.f32 %v1141_v38, 0.0  ;;  %v1612_v43 = vpop.f32.mrb[12].mxu0  ;;  %v1636_v45 = vpop.f32.mrb[12].mxu1 }
 0x36e   : > { %v1613_v46 = vpop.f32.mrb[13].mxu0  ;;  %v1637_v47 = vpop.f32.mrb[13].mxu1 }
 0x36f   : > { %v1528_v48 = vpack.c.bf16 %v1157_v41, %v1156_v39  ;;  %v1548_v49 = vpack.c.bf16 %v1165_v42, %v1164_v40  ;;  %v1614_v50 = vadd.f32 %v1613_v46, %v1612_v43  ;;  %v1638_v51 = vadd.f32 %v1637_v47, %v1636_v45  ;;  %v1615_v52 = vpop.f32.mrb[14].mxu0  ;;  %v1639_v53 = vpop.f32.mrb[14].mxu1 }
 0x370   : > { %v1616_v54 = vpop.f32.mrb[15].mxu0  ;;  %v1640_v55 = vpop.f32.mrb[15].mxu1 }
 0x371   : > { %1556 = vst [vmem:[%s2517_s27 + $0x10] sm:$0xff] %v1528_v48   ;;  %1560 = vst [vmem:[%s2517_s27 + $0x30] sm:$0xff] %v1548_v49   ;;  %v1114_v56 = vadd.f32 %v1614_v50, %v2562_v44  ;;  %v1146_v57 = vadd.f32 %v1638_v51, %v2562_v44  ;;  %v1617_v58 = vadd.f32 %v1616_v54, %v1615_v52 }
 0x372   : > { %v1641_v59 = vadd.f32 %v1640_v55, %v1639_v53 }
 0x373   : > { %v1117_v60 = vadd.f32 %v1617_v58, %v2562_v44  ;;  %v1158_v62 = vmax.f32 %v1114_v56, 0.0  ;;  %v1166_v63 = vmax.f32 %v1146_v57, 0.0 }
 0x374   : > { %v1149_v61 = vadd.f32 %v1641_v59, %v2562_v44 }
 0x375   : > { %v1159_v0 = vmax.f32 %v1117_v60, 0.0 }
 0x376   : > { %v1167_v1 = vmax.f32 %v1149_v61, 0.0 }
 0x377   : > { %v1533_v2 = vpack.c.bf16 %v1159_v0, %v1158_v62 }
 0x378   : > { %v1553_v3 = vpack.c.bf16 %v1167_v1, %v1166_v63 }
 0x379   : > { %1557 = vst [vmem:[%s2517_s27 + $0x18] sm:$0xff] %v1533_v2  }
 0x37a   : > { %1561 = vst [vmem:[%s2517_s27 + $0x38] sm:$0xff] %v1553_v3  }
 0x37b PF: > { %s2748_s16 = sld [smem:[#allocation23_spill]]  ;;  %s2749_s6 = sld [smem:[#allocation31_spill]] }
 0x37c   : > { %s2750_s7 = sld [smem:[#allocation37_spill]]  ;;  %s1262_s10 = sshll.u32 %s2517_s27, 4  ;;  %s2595_s10 = int_to_ptr.vmem [resolvable:$true] %s1262_s10 }
 0x37d   : > { %s2599_s0 = scalar_lea.sflag [#allocation9], %s404_s8  ;;  %s1987_s23 = scalar_lea.vmem %s2595_s10, 1024 }
 0x37e   : > { %p1988_p4 = scmp.ne.s32.totalorder %s2595_s10, %s1987_s23  ;;  %s2148_s28 = smov [#allocation13]  }
 0x37f   : > { %s1991_s13 = sshll.u32 %s2148_s28, 4  ;;  %s1992_s13 = int_to_ptr.vmem [resolvable:$false] %s1991_s13 }
 0x380   : > { %s1993_s1 = scalar_lea.vmem %s1992_s13, 2048  ;;  %p1994_p3 = scmp.lt.s32.totalorder %s2595_s10, %s1992_s13 }
 0x381   : > { %s1514_s2 = sshll.u32 %s2748_s16, 10  ;;  %p2751_p8 = scmp.ne.s32.totalorder %s2749_s6, 0 }
 0x382   : > { %s2592_s30 = scalar_lea.hbm %s2750_s7, %s1514_s2  ;;  %p1995_p13 = scmp.lt.s32.totalorder %s1993_s1, %s1987_s23 }
 0x383   : > { %p1989_p6 = pnand %p1988_p4, %p2751_p8 }
 0x384   : > { %p1996_p12 = por %p1995_p13, %p1994_p3 }
 0x385   : > { %p1990_p7 = pneg %p1989_p6 }
 0x387   : > { %p1997_p10 = pnand %p1996_p12, %p1990_p7 }
 0x389   : > { %2000 = shalt.err (!%p1997_p10)
}
 0x38a   : > { %s2001_s8 = scalar_lea.hbm %s2592_s30, 1024  ;;  %s2005_s26 = scalar_lea.hbm %s2750_s7, 3072 }
 0x38b   : > { %p2002_p5 = scmp.ne.s32.totalorder %s2592_s30, %s2001_s8  ;;  %p2006_p9 = scmp.lt.u32.totalorder %s2592_s30, %s2750_s7 }
 0x38c   : > { %p2007_p1 = scmp.lt.u32.totalorder %s2005_s26, %s2001_s8  ;;  %p2009_p4 = scmp.lt.u32.totalorder %s2001_s8, %s2592_s30 }
 0x38d   : > { %p2003_p11 = pnand %p2002_p5, %p2751_p8 }
 0x38e   : > { %p2008_p2 = por %p2007_p1, %p2006_p9 }
 0x38f   : > { %p2004_p0 = pneg %p2003_p11 }
 0x390   : > { %p2010_p6 = por %p2009_p4, %p2008_p2 }
 0x392   : > { %p2011_p7 = pnand %p2010_p6, %p2004_p0 }
 0x394   : > { %2014 = shalt.err (!%p2011_p7)
}
 0x395   : > { %s2149_s5 = smov 64   ;;  %s2150_s11 = smov 4  }
 0x396   : > { %1717 = dma.vmem_to_hbm [thread:$0]  (%p2751_p8), %s2595_s10, 1024, %s2592_s30, %s2599_s0, %s2149_s5, %s2149_s5, %s2150_s11  }
 0x397 PF: > { %s2752_s17 = sld [smem:[#allocation20_spill]]  ;;  %s2753_s12 = sld [smem:[#allocation32_spill]] }
 0x398   : > { %p1729_p3 = scmp.ge.s32.totalorder %s2135_s25, 2 }
 0x39d   : > { %s1277_s16 = sand.u32 1, %s2752_s17   ;;  %p2754_p13 = scmp.ne.s32.totalorder %s2753_s12, 0 }
 0x39e   : > { %s1278_s2 = scalar_lea.sflag [#allocation9], %s1277_s16 }
 0x39f   : > { %p1724_p12 = pnand %p1729_p3, %p2754_p13 }
 0x3a1   : > { %2082 = dma.done.wait (!%p1724_p12), %s1278_s2, 1024  }
 0x3a2   : > { %2084 = vsyncadd (!%p1724_p12), %s1278_s2, 4294966272  ;;  %s37_s25 = sadd.s32 1, %s2135_s25   ;;  %s2756_s6 = sld [smem:[#allocation28_spill]] }
 0x3a3   : > { %p2628_p10 = scmp.ge.s32.totalorder %s37_s25, 8   ;;  %s2757_s16 = sld [smem:[#allocation21_spill]] }
 0x3a4   : > { %s2758_s22 = sld [smem:[#allocation29_spill]]  ;;  %s2759_s30 = sld [smem:[#allocation30_spill]] }
 0x3a5   : > { %s2760_s21 = sld [smem:[#allocation24_spill]]  ;;  %s2761_s23 = sld [smem:[#allocation25_spill]] }
 0x3a6   : > { %s2762_s10 = sld [smem:[#allocation26_spill]]  ;;  %s2764_s1 = smov %s2091_s14 }
 0x3a7   : > { %s2765_s14 = smov %s2095_s15  ;;  %s2767_s17 = smov %s2107_s18 }
 0x3a8   : > { %s2766_s15 = smov %s2756_s6  ;;  %s2769_s19 = smov %s2115_s20 }
 0x3a9   :  { %36 = sbr.rel (!%p2628_p10) target bundleno = 40 (0x28), region = 167 }
 0x3aa   : > { %s2768_s18 = smov %s2758_s22  ;;  %s2770_s20 = smov %s2759_s30 }
 0x3ab   : > { %s2771_s22 = smov %s2131_s24 }
 0x3ac   : > { %s2772_s24 = smov %s2762_s10 }
 0x3b0   :  { %1283 = vsyncpa [#allocation8], 1 }
 0x3b1   :  { %1285 = vsyncpa [#allocation8 + $0x1], 1 }
 0x3b2   :  { %1286 = vsyncpa [#allocation11], 1 }
 0x3b3   :  { %1288 = vsyncpa [#allocation11 + $0x1], 1 }
 0x3b4   :  { %1289 = vsyncpa [#allocation9], 1 }
 0x3b5   :  { %1291 = vsyncpa [#allocation9 + $0x1], 1 }

</bundles_post_ra>
